<compile_context>
chip_gen: v6e
topology: v6e:2x2x1
jax: 0.10.0
libtpu: 0.0.40
codegen_flags: <defaults>
</compile_context>

<pallas_src>
import functools

import jax
import jax.numpy as jnp
from jax.experimental import pallas as pl
from jax.experimental.pallas import tpu as pltpu


def _gab_kernel(rgb_ref, t_ref, w1_rgb_ref, w1_t_ref, w2_ref,
                rgb_out_ref, t_out_ref):
    """One batch-tile per grid step.

    rgb_ref, t_ref         : (Bt, C, HW)   feature maps, spatial on lanes
    w1_rgb_ref, w1_t_ref   : (C, HID)      rgb / t halves of fc[0] weight (pre-transposed)
    w2_ref                 : (HID, 2C)     fused fc[2] weight (pre-transposed), [rgb | t]
    rgb_out_ref, t_out_ref : (Bt, C, HW)   gated feature maps
    """
    C = rgb_ref.shape[1]

    # AdaptiveAvgPool2d(1): global mean over spatial (lane reduce on the XLU),
    # f32 accumulation WITHOUT materializing an f32 copy of the whole slab.
    p_rgb = jnp.mean(rgb_ref[...], axis=-1, dtype=jnp.float32)        # (Bt, C)
    p_t = jnp.mean(t_ref[...], axis=-1, dtype=jnp.float32)            # (Bt, C)

    # fc[0]: Conv2d(2C -> HID, 1, bias=False) on the 1x1 pooled map.  The
    # logical channel-concat of the PyTorch module becomes a sum of two small
    # matmuls (no in-kernel concat along channels).
    h = (jnp.dot(p_rgb, w1_rgb_ref[...], preferred_element_type=jnp.float32)
         + jnp.dot(p_t, w1_t_ref[...], preferred_element_type=jnp.float32))
    h = jnp.maximum(h, 0.0)                                            # ReLU

    # fc[2]: Conv2d(HID -> 2C, 1, bias=False) + Sigmoid as ONE fused matmul +
    # sigmoid (single MXU round trip on the serial pool->gate critical path),
    # then split into the rgb / t gates with static slices.
    y = jax.nn.sigmoid(
        jnp.dot(h, w2_ref[...], preferred_element_type=jnp.float32))  # (Bt, 2C)
    y_rgb = y[:, :C].astype(rgb_out_ref.dtype)                        # (Bt, C)
    y_t = y[:, C:].astype(t_out_ref.dtype)                            # (Bt, C)

    # union_feature * y.expand_as(...): per-(batch, channel) scalar gate
    # broadcast across the spatial (lane) axis.  Multiply in the native
    # activation dtype (no f32 slab copy); re-index the input refs here so no
    # block-sized value stays live across the FC chain.
    rgb_out_ref[...] = rgb_ref[...] * y_rgb[..., None]
    t_out_ref[...] = t_ref[...] * y_t[..., None]


def _choose_block_batch(B, per_batch_bytes):
    """Pick the batch-tile size bt (a divisor of B).

    Priorities for this HBM-bandwidth-bound kernel:
      1. pipeline depth: >= 4 grid steps, 8+ if B allows (hides DMA fill/drain),
      2. an even step count so v7x megacore gives both TensorCores equal,
         pipelineable work,
      3. blocks >= ~1 MiB (enough to hit ~85% of HBM roofline),
      4. then bigger blocks, capped at ~4 MiB so 2-in + 2-out double-buffered
         VMEM stays well under v7x's 64 MiB physical limit.
    """
    min_bytes = 1 << 20
    max_bytes = 4 << 20
    best, best_score = 1, None
    for bt in range(1, B + 1):
        if B % bt:
            continue
        steps = B // bt
        blk = bt * per_batch_bytes
        if blk > max_bytes and bt > 1:
            continue
        score = (
            min(steps, 8),                               # pipeline depth (capped)
            1 if (steps == 1 or steps % 2 == 0) else 0,  # even megacore split
            1 if blk >= min_bytes else 0,                # roofline-sized block
            blk,                                         # then prefer bigger
        )
        if best_score is None or score > best_score:
            best, best_score = bt, score
    return best


@functools.partial(jax.jit, static_argnames=("block_batch",))
def global_attention_block(rgb_feature, t_feature, w1, w2, *, block_batch=None):
    """Pallas implementation of GlobalAttentionBlock.forward.

    rgb_feature, t_feature : (B, C, H, W)  NCHW feature maps
    w1 : (C2//r, C2)  weight of fc[0] 1x1 conv (out, in), C2 = 2*C
    w2 : (C2, C2//r)  weight of fc[2] 1x1 conv (out, in)
    returns (rgb_out, t_out), each (B, C, H, W)
    """
    B, C, H, W = rgb_feature.shape
    HID = w1.shape[0]
    HW = H * W
    dtype = rgb_feature.dtype
    itemsize = jnp.dtype(dtype).itemsize

    # Free (contiguous) reshape: NCHW -> (B, C, HW); channels on sublanes,
    # spatial on lanes.  No concat / transpose / slice round trips in HBM.
    # (If H*W is not a multiple of 128 we accept the masked-tail stores; do
    # NOT pad in the wrapper — that would cost a full extra HBM pass.)
    rgb_x = rgb_feature.reshape(B, C, HW)
    t_x = t_feature.reshape(B, C, HW)

    # Tiny 1x1-conv weights: pre-transpose once; split fc[0] into rgb / t
    # halves (so the kernel never concatenates along channels) and keep fc[2]
    # FUSED as a single (HID, 2C) matmul.
    w1t = jnp.transpose(w1)                   # (2C, HID)
    w1t_rgb, w1t_t = w1t[:C], w1t[C:]         # (C, HID) each
    w2t = jnp.transpose(w2)                   # (HID, 2C) = [rgb | t]

    per_batch_bytes = C * HW * itemsize
    bt = (_choose_block_batch(B, per_batch_bytes)
          if block_batch is None else block_batch)
    steps = B // bt
    grid = (steps,)
    block_bytes = bt * per_batch_bytes

    # Deeper input prefetch when the grid is shallow-but-multi-step and the
    # blocks are small (hides the short per-step compute behind DMA); skipped
    # on deep grids where plain double-buffering already ramps.
    use_buffered = (3 <= steps < 8) and block_bytes <= (2 << 20)

    feat_spec = pl.BlockSpec((bt, C, HW), lambda b: (b, 0, 0))
    feat_in_spec = feat_spec
    if use_buffered:
        try:
            feat_in_spec = pl.BlockSpec((bt, C, HW), lambda b: (b, 0, 0),
                                        pipeline_mode=pl.Buffered(3))
        except (TypeError, AttributeError):
            feat_in_spec = feat_spec

    # VMEM budget: inputs (2- or 3-deep) + double-buffered outputs + tiny
    # weights + slack; clamped at 48 MiB so the compiler keeps scratch
    # headroom under v7x's 64 MiB physical VMEM (v5e/v6e have 128 MiB, but
    # their default scoped limits of 16/32 MiB need the explicit override).
    in_bufs = 3 if use_buffered else 2
    vmem_limit = ((2 * in_bufs + 2 * 2) * block_bytes
                  + 4 * C * HID * 4 + (2 << 20))
    vmem_limit = int(min(max(vmem_limit, 4 << 20), 48 << 20))
    # TODO(synk): if a single bt=1 block is ever too large for this budget,
    # fall back to an HW-chunked pooling pass + manual (pl.ANY +
    # make_async_copy) gated writeback instead of relying on the clamp.
    # TODO(synk): for B == 1 (single grid step) overlap could be recovered by
    # chunked pool accumulation over the input DMA and an async rgb writeback
    # while the t stream is still being gated; the simple path is kept here.

    rgb_out, t_out = pl.pallas_call(
        _gab_kernel,
        out_shape=(jax.ShapeDtypeStruct((B, C, HW), dtype),
                   jax.ShapeDtypeStruct((B, C, HW), dtype)),
        grid_spec=pltpu.PrefetchScalarGridSpec(
            num_scalar_prefetch=0,
            grid=grid,
            in_specs=[
                feat_in_spec,                                 # rgb features
                feat_in_spec,                                 # thermal features
                pl.BlockSpec((C, HID), lambda b: (0, 0)),     # w1^T, rgb half
                pl.BlockSpec((C, HID), lambda b: (0, 0)),     # w1^T, t half
                pl.BlockSpec((HID, 2 * C), lambda b: (0, 0)), # w2^T, fused
            ],
            out_specs=[feat_spec, feat_spec],
        ),
        compiler_params=pltpu.CompilerParams(
            dimension_semantics=("parallel",),
            vmem_limit_bytes=vmem_limit),
    )(rgb_x, t_x, w1t_rgb, w1t_t, w2t)

    return rgb_out.reshape(B, C, H, W), t_out.reshape(B, C, H, W)


def _reference(rgb_feature, t_feature, w1, w2):
    """Pure-JAX reference matching the PyTorch forward."""
    C = rgb_feature.shape[1]
    u = jnp.concatenate([rgb_feature, t_feature], axis=1)        # (B, C2, H, W)
    y = jnp.mean(u, axis=(2, 3))                                 # (B, C2)
    y = jnp.maximum(y @ w1.T, 0.0)                               # (B, HID)
    y = jax.nn.sigmoid(y @ w2.T)                                 # (B, C2)
    u = u * y[:, :, None, None]
    return u[:, :C], u[:, C:]


if __name__ == "__main__":
    # Small shapes consistent with the module: each input has C channels, the
    # fc block acts on channel = 2*C with reduction r.
    B, C, H, W = 2, 4, 16, 16
    C2 = 2 * C
    reduction = 2
    HID = C2 // reduction

    key = jax.random.PRNGKey(0)
    k_rgb, k_t, k_w1, k_w2 = jax.random.split(key, 4)

    rgb = jax.random.normal(k_rgb, (B, C, H, W), dtype=jnp.float32)
    t = jax.random.normal(k_t, (B, C, H, W), dtype=jnp.float32)

    # Deterministic kaiming-normal (mode='fan_out') init for the two 1x1
    # convs; weight shape (out, in) since kernel size is 1x1 and bias=False.
    w1 = jax.random.normal(k_w1, (HID, C2), dtype=jnp.float32) * jnp.sqrt(2.0 / HID)
    w2 = jax.random.normal(k_w2, (C2, HID), dtype=jnp.float32) * jnp.sqrt(2.0 / C2)

    rgb_out, t_out = global_attention_block(rgb, t, w1, w2)
    jax.block_until_ready((rgb_out, t_out))

    rgb_ref, t_ref = _reference(rgb, t, w1, w2)
    assert rgb_out.shape == (B, C, H, W) and t_out.shape == (B, C, H, W)
    assert jnp.allclose(rgb_out, rgb_ref, atol=1e-5, rtol=1e-5)
    assert jnp.allclose(t_out, t_ref, atol=1e-5, rtol=1e-5)

    print("KERNEL_OK")
</pallas_src>

<mosaic_0001>
module attributes {stable_mosaic.version = 11 : i64} {
  func.func @_gab_kernel(%arg0: i32, %arg1: memref<1x4x256xf32, #tpu.memory_space<vmem>>, %arg2: memref<1x4x256xf32, #tpu.memory_space<vmem>>, %arg3: memref<4x4xf32, #tpu.memory_space<vmem>>, %arg4: memref<4x4xf32, #tpu.memory_space<vmem>>, %arg5: memref<4x8xf32, #tpu.memory_space<vmem>>, %arg6: memref<1x4x256xf32, #tpu.memory_space<vmem>>, %arg7: memref<1x4x256xf32, #tpu.memory_space<vmem>>) attributes {dimension_semantics = [#tpu.dimension_semantics<parallel>], iteration_bounds = array<i64: 2>, scalar_prefetch = 0 : i64, scratch_operands = 0 : i64, tpu.core_type = #tpu.core_type<tc>, window_params = [{transform_indices = @transform_0, window_bounds = array<i64: 1, 4, 256>}, {transform_indices = @transform_1, window_bounds = array<i64: 1, 4, 256>}, {pipeline_mode = #tpu.pipeline_mode<synchronous>, transform_indices = @transform_2, window_bounds = array<i64: 4, 4>}, {pipeline_mode = #tpu.pipeline_mode<synchronous>, transform_indices = @transform_3, window_bounds = array<i64: 4, 4>}, {pipeline_mode = #tpu.pipeline_mode<synchronous>, transform_indices = @transform_4, window_bounds = array<i64: 4, 8>}, {transform_indices = @transform_5, window_bounds = array<i64: 1, 4, 256>}, {transform_indices = @transform_6, window_bounds = array<i64: 1, 4, 256>}]} {
    %c0 = arith.constant 0 : index
    %c0_0 = arith.constant 0 : index
    %c0_1 = arith.constant 0 : index
    %0 = vector.load %arg1[%c0, %c0_0, %c0_1] : memref<1x4x256xf32, #tpu.memory_space<vmem>>, vector<1x4x256xf32>
    %cst = arith.constant dense<0.000000e+00> : vector<1x4xf32>
    %1 = vector.multi_reduction <add>, %0, %cst [2] : vector<1x4x256xf32> to vector<1x4xf32>
    %cst_2 = arith.constant 2.560000e+02 : f32
    %2 = vector.broadcast %cst_2 : f32 to vector<1x4xf32>
    %3 = arith.divf %1, %2 : vector<1x4xf32>
    %c0_3 = arith.constant 0 : index
    %c0_4 = arith.constant 0 : index
    %c0_5 = arith.constant 0 : index
    %4 = vector.load %arg2[%c0_3, %c0_4, %c0_5] : memref<1x4x256xf32, #tpu.memory_space<vmem>>, vector<1x4x256xf32>
    %cst_6 = arith.constant dense<0.000000e+00> : vector<1x4xf32>
    %5 = vector.multi_reduction <add>, %4, %cst_6 [2] : vector<1x4x256xf32> to vector<1x4xf32>
    %cst_7 = arith.constant 2.560000e+02 : f32
    %6 = vector.broadcast %cst_7 : f32 to vector<1x4xf32>
    %7 = arith.divf %5, %6 : vector<1x4xf32>
    %c0_8 = arith.constant 0 : index
    %c0_9 = arith.constant 0 : index
    %8 = vector.load %arg3[%c0_8, %c0_9] : memref<4x4xf32, #tpu.memory_space<vmem>>, vector<4x4xf32>
    %cst_10 = arith.constant dense<0.000000e+00> : vector<1x4xf32>
    %9 = tpu.matmul %3, %8, %cst_10 {dimension_numbers = #tpu.dot_dimension_numbers<[1], [0], [0], [1], [0, 0, 1, 1], [], []>} : vector<1x4xf32>, vector<4x4xf32>, vector<1x4xf32> -> vector<1x4xf32>
    %c0_11 = arith.constant 0 : index
    %c0_12 = arith.constant 0 : index
    %10 = vector.load %arg4[%c0_11, %c0_12] : memref<4x4xf32, #tpu.memory_space<vmem>>, vector<4x4xf32>
    %cst_13 = arith.constant dense<0.000000e+00> : vector<1x4xf32>
    %11 = tpu.matmul %7, %10, %cst_13 {dimension_numbers = #tpu.dot_dimension_numbers<[1], [0], [0], [1], [0, 0, 1, 1], [], []>} : vector<1x4xf32>, vector<4x4xf32>, vector<1x4xf32> -> vector<1x4xf32>
    %12 = arith.addf %9, %11 : vector<1x4xf32>
    %cst_14 = arith.constant 0.000000e+00 : f32
    %13 = vector.broadcast %cst_14 : f32 to vector<1x4xf32>
    %14 = arith.maximumf %12, %13 : vector<1x4xf32>
    %c0_15 = arith.constant 0 : index
    %c0_16 = arith.constant 0 : index
    %15 = vector.load %arg5[%c0_15, %c0_16] : memref<4x8xf32, #tpu.memory_space<vmem>>, vector<4x8xf32>
    %cst_17 = arith.constant dense<0.000000e+00> : vector<1x8xf32>
    %16 = tpu.matmul %14, %15, %cst_17 {dimension_numbers = #tpu.dot_dimension_numbers<[1], [0], [0], [1], [0, 0, 1, 1], [], []>} : vector<1x4xf32>, vector<4x8xf32>, vector<1x8xf32> -> vector<1x8xf32>
    %17 = arith.negf %16 : vector<1x8xf32>
    %18 = math.exp %17 : vector<1x8xf32>
    %cst_18 = arith.constant 1.000000e+00 : f32
    %19 = vector.broadcast %cst_18 : f32 to vector<1x8xf32>
    %20 = arith.addf %19, %18 : vector<1x8xf32>
    %21 = arith.divf %19, %20 : vector<1x8xf32>
    %22 = vector.extract_strided_slice %21 {offsets = [0, 0], sizes = [1, 4], strides = [1, 1]} : vector<1x8xf32> to vector<1x4xf32>
    %23 = vector.extract_strided_slice %21 {offsets = [0, 4], sizes = [1, 4], strides = [1, 1]} : vector<1x8xf32> to vector<1x4xf32>
    %c0_19 = arith.constant 0 : index
    %c0_20 = arith.constant 0 : index
    %c0_21 = arith.constant 0 : index
    %24 = vector.load %arg1[%c0_19, %c0_20, %c0_21] : memref<1x4x256xf32, #tpu.memory_space<vmem>>, vector<1x4x256xf32>
    %25 = vector.shape_cast %22 : vector<1x4xf32> to vector<1x4x1xf32>
    %26 = vector.broadcast %25 : vector<1x4x1xf32> to vector<1x4x256xf32>
    %27 = arith.mulf %24, %26 : vector<1x4x256xf32>
    %c0_22 = arith.constant 0 : index
    %c0_23 = arith.constant 0 : index
    %c0_24 = arith.constant 0 : index
    %28 = vector.load %arg6[%c0_22, %c0_23, %c0_24] : memref<1x4x256xf32, #tpu.memory_space<vmem>>, vector<1x4x256xf32>
    tpu.vector_store %arg6[%c0_22, %c0_23, %c0_24], %27 {strides = array<i32>} : memref<1x4x256xf32, #tpu.memory_space<vmem>>, vector<1x4x256xf32>,
    %c0_25 = arith.constant 0 : index
    %c0_26 = arith.constant 0 : index
    %c0_27 = arith.constant 0 : index
    %29 = vector.load %arg2[%c0_25, %c0_26, %c0_27] : memref<1x4x256xf32, #tpu.memory_space<vmem>>, vector<1x4x256xf32>
    %30 = vector.shape_cast %23 : vector<1x4xf32> to vector<1x4x1xf32>
    %31 = vector.broadcast %30 : vector<1x4x1xf32> to vector<1x4x256xf32>
    %32 = arith.mulf %29, %31 : vector<1x4x256xf32>
    %c0_28 = arith.constant 0 : index
    %c0_29 = arith.constant 0 : index
    %c0_30 = arith.constant 0 : index
    %33 = vector.load %arg7[%c0_28, %c0_29, %c0_30] : memref<1x4x256xf32, #tpu.memory_space<vmem>>, vector<1x4x256xf32>
    tpu.vector_store %arg7[%c0_28, %c0_29, %c0_30], %32 {strides = array<i32>} : memref<1x4x256xf32, #tpu.memory_space<vmem>>, vector<1x4x256xf32>,
    return
  }
  func.func @transform_0(%arg0: i32) -> (i32, i32, i32) {
    %c0_i32 = arith.constant 0 : i32
    %c0_i32_0 = arith.constant 0 : i32
    %c0_i32_1 = arith.constant 0 : i32
    return %arg0, %c0_i32, %c0_i32_0 : i32, i32, i32
  }
  func.func @transform_1(%arg0: i32) -> (i32, i32, i32) {
    %c0_i32 = arith.constant 0 : i32
    %c0_i32_0 = arith.constant 0 : i32
    %c0_i32_1 = arith.constant 0 : i32
    return %arg0, %c0_i32, %c0_i32_0 : i32, i32, i32
  }
  func.func @transform_2(%arg0: i32) -> (i32, i32) {
    %c0_i32 = arith.constant 0 : i32
    %c0_i32_0 = arith.constant 0 : i32
    %c0_i32_1 = arith.constant 0 : i32
    return %c0_i32, %c0_i32_0 : i32, i32
  }
  func.func @transform_3(%arg0: i32) -> (i32, i32) {
    %c0_i32 = arith.constant 0 : i32
    %c0_i32_0 = arith.constant 0 : i32
    %c0_i32_1 = arith.constant 0 : i32
    return %c0_i32, %c0_i32_0 : i32, i32
  }
  func.func @transform_4(%arg0: i32) -> (i32, i32) {
    %c0_i32 = arith.constant 0 : i32
    %c0_i32_0 = arith.constant 0 : i32
    %c0_i32_1 = arith.constant 0 : i32
    return %c0_i32, %c0_i32_0 : i32, i32
  }
  func.func @transform_5(%arg0: i32) -> (i32, i32, i32) {
    %c0_i32 = arith.constant 0 : i32
    %c0_i32_0 = arith.constant 0 : i32
    %c0_i32_1 = arith.constant 0 : i32
    return %arg0, %c0_i32, %c0_i32_0 : i32, i32, i32
  }
  func.func @transform_6(%arg0: i32) -> (i32, i32, i32) {
    %c0_i32 = arith.constant 0 : i32
    %c0_i32_0 = arith.constant 0 : i32
    %c0_i32_1 = arith.constant 0 : i32
    return %arg0, %c0_i32, %c0_i32_0 : i32, i32, i32
  }
}

</mosaic_0001>

<bundles_post_ra>
// kernel: global_attention_block.1
= control target key start
LH: loop header
LB: loop body
LE: loop exit
PB: predicated region body
PF: predicated region fallthrough
CT: control target
= control target key end

     0   :  { %s800_s21 = smov 0   ;;  %s863_s0 = inlined_call_operand.vmem [shape: f32[2,4,256], index: 0, kind: input, shape index: {}]   ;;  %s864_s1 = inlined_call_operand.vmem [shape: f32[2,4,256], index: 1, kind: input, shape index: {}]   ;;  %s865_s2 = inlined_call_operand.vmem [shape: f32[4,4], index: 2, kind: input, shape index: {}]   ;;  %s866_s3 = inlined_call_operand.vmem [shape: f32[4,4], index: 3, kind: input, shape index: {}]   ;;  %s867_s4 = inlined_call_operand.vmem [shape: f32[4,8], index: 4, kind: input, shape index: {}]   ;;  %s868_s5 = inlined_call_operand.vmem [shape: f32[2,4,256], index: 5, kind: output, shape index: {0}]   ;;  %s869_s6 = inlined_call_operand.vmem [shape: f32[2,4,256], index: 6, kind: output, shape index: {1}]  }
   0x1 LB: > { %s690_s22 = sadd.s32 4294967295, %s760_s21   ;;  %p694_p0 = scmp.ge.s32.totalorder %s760_s21, 1  ;;  %s760_s21 = sphi %s800_s21, %s17_s21  }
   0x2   : > { %p225_p1 = scmp.lt.s32.totalorder %s760_s21, 3 }
   0x4   : > { %p226_p2 = pnand %p694_p0, %p225_p1 }
   0x5   : > { %p265_p3 = scmp.lt.s32.totalorder (!%p226_p2), %s690_s22, 1 }
   0x6   : > { %229 = sbr.rel (%p226_p2) target bundleno = 714 (0x2ca), region = 40 }
   0xb   : > { %s871_s22 = smov (!%p265_p3, %s690_s22), 1  ;;  %vm289_vm0 = vcmask 1043456   ;;  %v762_v10 = vmov 0.0   ;;  %v307_v11 = vld [vmem:[%s865_s2] sm:$0xf]  ;;  %vm763_vm1 = vmmov 0   ;;  %v310_v13 = vlaneseq }
   0xc   : > { %s808_s23 = sshll.u32 %s871_s22, 3  ;;  %727 = vmatprep.subr.mxu1 %v762_v10  ;;  %722 = vmatprep.subr.mxu0 %v762_v10  ;;  %v308_v12 = vld [vmem:[%s866_s3] sm:$0xf]  ;;  %vm316_vm2 = vcmask 31744   ;;  %v764_v38 = vmov 839922192  }
   0xd   : > { %s269_s26 = scalar_lea.vmem %s863_s0, %s808_s23  ;;  %s274_s29 = scalar_lea.vmem %s864_s1, %s808_s23  ;;  %728 = vmatpush3.msk.msra.mxu1 %vm289_vm0, %v307_v11  ;;  %729 = vmatprep.mubr.msk.f32.mxu1 %vm763_vm1, %v762_v10  ;;  %v311_v14 = vand.u32 127, %v310_v13  ;;  %v313_v15 = vshrl.u32 %v310_v13, 7  ;;  %v473_v23 = vld [vmem:[%s867_s4] sm:$0xf]  ;;  %v565_v39 = vunpack.c.l.s4 %v764_v38 }
   0xe   : > { %v818_v0 = vld [vmem:[%s269_s26] sm:$0xff]  ;;  %724 = vmatprep.mubr.msk.f32.mxu0 %vm763_vm1, %v762_v10  ;;  %723 = vmatpush3.msk.msra.mxu0 %vm289_vm0, %v308_v12  ;;  %s279_s14 = scalar_lea.vmem %s868_s5, %s808_s23  ;;  %s284_s17 = scalar_lea.vmem %s869_s6, %s808_s23 }
   0xf   : > { %v820_v1 = vld [vmem:[%s274_s29] sm:$0xff]  ;;  %v287_v2 = vcombine.high %v818_v0, %v818_v0  ;;  %v290_v3 = vsel %vm289_vm0, %v818_v0, 0.0  ;;  %732 = vmatprep.subr.mxu0 %v762_v10  ;;  %v314_v16 = vsub.s32 %v311_v14, %v313_v15  ;;  %v558_v35 = vsub.s32 0, %v313_v15 }
  0x10   : > { %v299_v4 = vcombine.high %v820_v1, %v820_v1  ;;  %v301_v6 = vsel %vm289_vm0, %v820_v1, 0.0  ;;  %v566_v40 = vunpack.c.0.s8 %v565_v39 }
  0x11   : > { %v291_v5 = vsel %vm289_vm0, %v287_v2, 0.0 }
  0x12   : > { %v302_v7 = vsel %vm289_vm0, %v299_v4, 0.0  ;;  %v292_v8 = vadd.f32 %v291_v5, %v290_v3  ;;  %v569_v41 = vsub.s32 %v566_v40, %v313_v15 }
  0x13   : > { %v303_v9 = vadd.f32 %v302_v7, %v301_v6 }
  0x14   : > { %293 = vadd.xlane.f32.xlu0 %v292_v8 }
  0x18   : > { %304 = vadd.xlane.f32.xlu0 %v303_v9 }
  0x9d   : > { %v294_v17 = vpop.xlane.xlu0 %293 }
  0x9e   : > { %v296_v18 = vmul.f32 0.00390625, %v294_v17 }
  0xa0   : > { %v396_v19 = vrot.slane %v296_v18, %v314_v16 }
  0xa1   : > { %v305_v20 = vpop.xlane.xlu0 %304 }
  0xa2   : > { %v306_v21 = vmul.f32 0.00390625, %v305_v20  ;;  %730 = vmatmul.mubr.msk.f32.vlgmr.msra.gmra.mxu1 %vm316_vm2, %v396_v19 }
  0xa4   : > { %v315_v22 = vrot.slane %v306_v21, %v314_v16 }
  0xa6   : > { %725 = vmatmul.mubr.msk.f32.vlgmr.msra.gmra.mxu0 %vm316_vm2, %v315_v22 }
  0xa7   : > { %734 = vmatprep.mubr.msk.f32.mxu0 %vm763_vm1, %v762_v10  ;;  %733 = vmatpush3.msk.msra.mxu0 %vm289_vm0, %v473_v23 }
 0x162   : > { %v468_v24 = vpop.f32.mrf.mxu1 }
 0x164   : > { %v731_v25 = vpop.f32.mrf.mxu1 }
 0x166   : > { %v388_v26 = vpop.f32.mrf.mxu0 }
 0x167   : > { %v469_v27 = vadd.f32 %v468_v24, %v388_v26 }
 0x168   : > { %v726_v28 = vpop.f32.mrf.mxu0 }
 0x169   : > { %v472_v29 = vmax.f32 %v469_v27, 0.0 }
 0x16b   : > { %735 = vmatmul.mubr.msk.f32.vlgmr.msra.gmra.mxu0 %vm316_vm2, %v472_v29 }
 0x22b   : > { %v546_v30 = vpop.f32.mrf.mxu0 }
 0x22c   : > { %v709_v31 = vmul.f32 -1.442695, %v546_v30 }
 0x22d   : > { %v736_v32 = vpop.f32.mrf.mxu0 }
 0x22e   : > { %750 = vpow2.f32 %v709_v31 }
 0x23b   : > { %v751_v33 = vpop.eup %750 }
 0x23c   : > { %v553_v34 = vadd.f32 1.0, %v751_v33 }
 0x23e   : > { %752 = vrcp.f32 %v553_v34 }
 0x24b   : > { %v753_v36 = vpop.eup %752 }
 0x24c   : > { %v559_v37 = vrot.slane %v753_v36, %v558_v35 }
 0x24e   : > { %561 = vbcast.lane.b32.xlu1 %v559_v37, 256 }
 0x252   : > { %577 = vbcast.lane.b32.xlu1 %v559_v37, 260 }
 0x2c0   : > { %v562_v42 = vpop.permute.xlu1 %561 }
 0x2c1   : > { %v570_v43 = vrot.slane %v562_v42, %v569_v41 }
 0x2c3   : > { %v572_v44 = vmul.f32 %v570_v43, %v818_v0 }
 0x2c4   : > { %v578_v45 = vpop.permute.xlu1 %577 }
 0x2c5   : > { %573 = vst [vmem:[%s279_s14] sm:$0xff] %v572_v44  ;;  %v586_v46 = vrot.slane %v578_v45, %v569_v41 }
 0x2c7   : > { %v588_v47 = vmul.f32 %v586_v46, %v820_v1 }
 0x2c9   : > { %589 = vst [vmem:[%s284_s17] sm:$0xff] %v588_v47 }
 0x2ca PF: > { %s17_s21 = sadd.s32 1, %s760_s21  }
 0x2cb   : > { %p14_p4 = scmp.ge.s32.totalorder %s17_s21, 4  }
 0x2cd   :  { %16 = sbr.rel (!%p14_p4) target bundleno = 1 (0x1), region = 85 }

</bundles_post_ra>
